<compile_context>
chip_gen: v6e
topology: v6e:2x2x1
jax: 0.10.0
libtpu: 0.0.40
codegen_flags: <defaults>
</compile_context>

<pallas_src>
import math

import jax
import jax.numpy as jnp
from jax.experimental import pallas as pl
from jax.experimental.pallas import tpu as pltpu


def _round_up(x, m):
    return (x + m - 1) // m * m


def _make_onehot_kernel(k_chunk, n_chunks, precision):
    """One-hot MXU gather: o[t, :] = sum_v (pos[t] == v) * w[v, :]."""
    dn = (((1,), (0,)), ((), ()))  # contract one-hot lanes with table rows

    if n_chunks == 1:

        def kernel(pos_ref, col_ref, w_ref, o_ref):
            # pos_ref: (tile, 1) i32; col_ref: (1, bs_pad) i32
            # w_ref:   (bs_pad, ne_pad); o_ref: (tile, ne_pad)
            one_hot = (col_ref[...] == pos_ref[...]).astype(w_ref.dtype)
            o_ref[...] = jax.lax.dot_general(
                one_hot,
                w_ref[...],
                dn,
                precision=precision,
                preferred_element_type=jnp.float32,
            ).astype(o_ref.dtype)

        return kernel

    def kernel(pos_ref, col_ref, w_ref, o_ref, acc_ref):
        acc_ref[...] = jnp.zeros_like(acc_ref)

        def body(k, carry):
            start = pl.multiple_of(k * k_chunk, k_chunk)
            ids = col_ref[:, pl.ds(start, k_chunk)]                # (1, k_chunk)
            one_hot = (ids == pos_ref[...]).astype(w_ref.dtype)    # (tile, k_chunk)
            acc_ref[...] += jax.lax.dot_general(
                one_hot,
                w_ref[pl.ds(start, k_chunk), :],
                dn,
                precision=precision,
                preferred_element_type=jnp.float32,
            )
            return carry

        jax.lax.fori_loop(0, n_chunks, body, 0, unroll=True)
        o_ref[...] = acc_ref[...].astype(o_ref.dtype)

    return kernel


def _row_gather_kernel(pos_smem, row_ref, o_ref):
    # Fallback path: the BlockSpec index_map already DMA'd row wpe[pos[i]] here.
    del pos_smem
    o_ref[...] = row_ref[...]


def _embed_dma_gather(pos_flat, wpe_pad, block_size, vmem_limit):
    """Large-table fallback: per-row DMA gather driven by scalar-prefetched pos."""
    n_rows = pos_flat.shape[0]
    bs_pad, ne_pad = wpe_pad.shape
    # Clamp so the row DMA never goes out of bounds.
    pos_c = jnp.clip(pos_flat, 0, block_size - 1).astype(jnp.int32)
    w3 = wpe_pad.reshape(bs_pad, 1, ne_pad)
    out = pl.pallas_call(
        _row_gather_kernel,
        out_shape=jax.ShapeDtypeStruct((n_rows, 1, ne_pad), wpe_pad.dtype),
        grid_spec=pltpu.PrefetchScalarGridSpec(
            num_scalar_prefetch=1,
            grid=(n_rows,),
            in_specs=[
                pl.BlockSpec((1, 1, ne_pad), lambda i, pos_s: (pos_s[i], 0, 0))
            ],
            out_specs=pl.BlockSpec((1, 1, ne_pad), lambda i, pos_s: (i, 0, 0)),
        ),
        compiler_params=pltpu.CompilerParams(
            dimension_semantics=("arbitrary",),
            vmem_limit_bytes=vmem_limit,
        ),
    )(pos_c, w3)
    return out.reshape(n_rows, ne_pad)


def embedder_forward(pos, wpe):
    """pos: int[...]; wpe: [block_size, n_embd] -> wpe[pos]: [..., n_embd]."""
    lead_shape = pos.shape
    block_size, n_embd = wpe.shape
    N = math.prod(lead_shape)
    if N == 0:
        return jnp.zeros((*lead_shape, n_embd), wpe.dtype)

    itemsize = jnp.dtype(wpe.dtype).itemsize

    # Lane-dense output columns; vocab padded to the K-chunk size.
    ne_pad = _round_up(n_embd, 128)
    if block_size <= 512:
        k_chunk = _round_up(block_size, 8)
        bs_pad = k_chunk
    else:
        k_chunk = 512
        bs_pad = _round_up(block_size, 512)
    n_chunks = bs_pad // k_chunk

    # Per-generation VMEM cap (leave ~15% headroom for compiler scratch).
    try:
        vmem_cap = int(pltpu.get_tpu_info().vmem_capacity_bytes)
    except Exception:
        vmem_cap = 64 << 20
    usable = int(vmem_cap * 0.85)

    table_bytes = bs_pad * ne_pad * itemsize  # single-buffered (Buffered(1))
    col_bytes = bs_pad * 4                    # resident column-id plane
    slack = 4 << 20

    def budget(tile):
        out_b = 2 * tile * ne_pad * itemsize  # double-buffered output tile
        pos_b = 2 * tile * 4                  # double-buffered pos tile
        oh_b = tile * k_chunk * itemsize      # per-step one-hot temporary
        acc_b = tile * ne_pad * 4 if n_chunks > 1 else 0
        return table_bytes + col_bytes + out_b + pos_b + oh_b + acc_b + slack

    tile = None
    for cand in (512, 256, 128, 64, 32, 16, 8):
        if budget(cand) <= usable:
            tile = cand
            break

    pos_flat = pos.reshape(N).astype(jnp.int32)

    if tile is None:
        # Table does not fit VMEM (e.g. huge tables on v7x): DMA row gather.
        wpe_pad = (
            wpe
            if ne_pad == n_embd
            else jnp.pad(wpe, ((0, 0), (0, ne_pad - n_embd)))
        )
        out = _embed_dma_gather(
            pos_flat, wpe_pad, block_size, int(min(usable, 32 << 20))
        )
        return out[:, :n_embd].reshape(*lead_shape, n_embd)

    # Don't over-pad tiny batches past the next sublane multiple.
    tile = max(8, min(tile, _round_up(N, 8)))
    num_tiles = pl.cdiv(N, tile)
    n_rows = num_tiles * tile

    if n_rows != N:
        # pad with index 0 (valid row); padded rows are dropped below.
        pos_flat = jnp.pad(pos_flat, (0, n_rows - N))
    pos_col = pos_flat.reshape(n_rows, 1)

    # Grid-invariant column ids, hoisted out of the kernel (resident input).
    col_ids = jax.lax.broadcasted_iota(jnp.int32, (1, bs_pad), 1)

    if (bs_pad, ne_pad) != (block_size, n_embd):
        wpe_pad = jnp.pad(wpe, ((0, bs_pad - block_size), (0, ne_pad - n_embd)))
    else:
        wpe_pad = wpe

    # Exact gather: 0/1 one-hot; HIGHEST precision keeps f32 rows exact.
    precision = (
        jax.lax.Precision.HIGHEST
        if wpe.dtype == jnp.float32
        else jax.lax.Precision.DEFAULT
    )
    kernel = _make_onehot_kernel(k_chunk, n_chunks, precision)

    scratch = [pltpu.VMEM((tile, ne_pad), jnp.float32)] if n_chunks > 1 else []
    vmem_limit = int(min(usable, max(budget(tile), 16 << 20)))

    out_flat = pl.pallas_call(
        kernel,
        out_shape=jax.ShapeDtypeStruct((n_rows, ne_pad), wpe.dtype),
        grid=(num_tiles,),
        in_specs=[
            # positions for this tile
            pl.BlockSpec((tile, 1), lambda i: (i, 0)),
            # resident column-id plane (grid-invariant), single-buffered
            pl.BlockSpec((1, bs_pad), lambda i: (0, 0),
                         pipeline_mode=pl.Buffered(1)),
            # resident embedding table, single-buffered (read from HBM once)
            pl.BlockSpec((bs_pad, ne_pad), lambda i: (0, 0),
                         pipeline_mode=pl.Buffered(1)),
        ],
        out_specs=pl.BlockSpec((tile, ne_pad), lambda i: (i, 0)),
        scratch_shapes=scratch,
        compiler_params=pltpu.CompilerParams(
            dimension_semantics=("parallel",),
            vmem_limit_bytes=vmem_limit,
        ),
    )(pos_col, col_ids, wpe_pad)

    out = out_flat[:N, :n_embd]
    return out.reshape(*lead_shape, n_embd)


if __name__ == "__main__":
    # Small, deterministic config (mirrors config.block_size / config.n_embd).
    block_size = 64
    n_embd = 128
    B, T = 2, 8

    key = jax.random.PRNGKey(0)
    k_w, k_p = jax.random.split(key)

    # nn.Embedding default init: N(0, 1)
    wpe = jax.random.normal(k_w, (block_size, n_embd), dtype=jnp.float32)
    pos = jax.random.randint(k_p, (B, T), 0, block_size, dtype=jnp.int32)

    out = jax.block_until_ready(embedder_forward(pos, wpe))

    # Reference: plain-JAX embedding lookup (== torch wpe(pos))
    ref = wpe[pos]
    assert out.shape == (B, T, n_embd), out.shape
    assert out.dtype == wpe.dtype
    assert jnp.allclose(out, ref, rtol=0.0, atol=1e-6), float(
        jnp.max(jnp.abs(out - ref))
    )

    print("KERNEL_OK")
</pallas_src>

<mosaic_0001>
module attributes {stable_mosaic.version = 11 : i64} {
  func.func @kernel(%arg0: i32, %arg1: memref<16x1xi32, #tpu.memory_space<vmem>>, %arg2: memref<1x64xi32, #tpu.memory_space<vmem>>, %arg3: memref<64x128xf32, #tpu.memory_space<vmem>>, %arg4: memref<16x128xf32, #tpu.memory_space<vmem>>) attributes {dimension_semantics = [#tpu.dimension_semantics<parallel>], iteration_bounds = array<i64: 1>, scalar_prefetch = 0 : i64, scratch_operands = 0 : i64, tpu.core_type = #tpu.core_type<tc>, window_params = [{transform_indices = @transform_0, window_bounds = array<i64: 16, 1>}, {pipeline_mode = #tpu.pipeline_mode<synchronous>, transform_indices = @transform_1, window_bounds = array<i64: 1, 64>}, {pipeline_mode = #tpu.pipeline_mode<synchronous>, transform_indices = @transform_2, window_bounds = array<i64: 64, 128>}, {transform_indices = @transform_3, window_bounds = array<i64: 16, 128>}]} {
    %c0 = arith.constant 0 : index
    %c0_0 = arith.constant 0 : index
    %0 = vector.load %arg2[%c0, %c0_0] : memref<1x64xi32, #tpu.memory_space<vmem>>, vector<1x64xi32>
    %c0_1 = arith.constant 0 : index
    %c0_2 = arith.constant 0 : index
    %1 = vector.load %arg1[%c0_1, %c0_2] : memref<16x1xi32, #tpu.memory_space<vmem>>, vector<16x1xi32>
    %2 = vector.broadcast %0 : vector<1x64xi32> to vector<16x64xi32>
    %3 = vector.broadcast %1 : vector<16x1xi32> to vector<16x64xi32>
    %4 = arith.cmpi eq, %2, %3 : vector<16x64xi32>
    %5 = arith.extui %4 : vector<16x64xi1> to vector<16x64xi32>
    %6 = arith.sitofp %5 : vector<16x64xi32> to vector<16x64xf32>
    %c0_3 = arith.constant 0 : index
    %c0_4 = arith.constant 0 : index
    %7 = vector.load %arg3[%c0_3, %c0_4] : memref<64x128xf32, #tpu.memory_space<vmem>>, vector<64x128xf32>
    %cst = arith.constant dense<0.000000e+00> : vector<16x128xf32>
    %8 = tpu.matmul %6, %7, %cst {dimension_numbers = #tpu.dot_dimension_numbers<[1], [0], [0], [1], [0, 0, 1, 1], [], []>, precision = #tpu.contract_precision<fp32>} : vector<16x64xf32>, vector<64x128xf32>, vector<16x128xf32> -> vector<16x128xf32>
    %c0_5 = arith.constant 0 : index
    %c0_6 = arith.constant 0 : index
    %9 = vector.load %arg4[%c0_5, %c0_6] : memref<16x128xf32, #tpu.memory_space<vmem>>, vector<16x128xf32>
    tpu.vector_store %arg4[%c0_5, %c0_6], %8 {strides = array<i32>} : memref<16x128xf32, #tpu.memory_space<vmem>>, vector<16x128xf32>,
    return
  }
  func.func @transform_0(%arg0: i32) -> (i32, i32) {
    %c0_i32 = arith.constant 0 : i32
    %c0_i32_0 = arith.constant 0 : i32
    return %arg0, %c0_i32 : i32, i32
  }
  func.func @transform_1(%arg0: i32) -> (i32, i32) {
    %c0_i32 = arith.constant 0 : i32
    %c0_i32_0 = arith.constant 0 : i32
    %c0_i32_1 = arith.constant 0 : i32
    return %c0_i32, %c0_i32_0 : i32, i32
  }
  func.func @transform_2(%arg0: i32) -> (i32, i32) {
    %c0_i32 = arith.constant 0 : i32
    %c0_i32_0 = arith.constant 0 : i32
    %c0_i32_1 = arith.constant 0 : i32
    return %c0_i32, %c0_i32_0 : i32, i32
  }
  func.func @transform_3(%arg0: i32) -> (i32, i32) {
    %c0_i32 = arith.constant 0 : i32
    %c0_i32_0 = arith.constant 0 : i32
    return %arg0, %c0_i32 : i32, i32
  }
}

</mosaic_0001>

<bundles_post_ra>
// kernel: tpu_custom_call.1
= control target key start
LH: loop header
LB: loop body
LE: loop exit
PB: predicated region body
PF: predicated region fallthrough
CT: control target
= control target key end

     0   :  { %8 = vsyncpa [#allocation3], 0  ;;  %s1123_s0 = inlined_call_operand.vmem [shape: s32[16,1], index: 0, kind: input, shape index: {}]   ;;  %s1124_s1 = inlined_call_operand.vmem [shape: s32[1,64], index: 1, kind: input, shape index: {}]   ;;  %s1125_s2 = inlined_call_operand.hbm [shape: f32[64,128], index: 2, kind: input, shape index: {}]   ;;  %s1126_s3 = inlined_call_operand.hbm [shape: f32[16,128], index: 3, kind: output, shape index: {}]  }
   0x1   :  { %9 = vsyncpa [#allocation4], 0  ;;  %s896_s12 = smov [#allocation2]  }
   0x2   :  { %s19_s13 = sshll.u32 %s896_s12, 4  ;;  %s20_s13 = int_to_ptr.vmem [resolvable:$true] %s19_s13 }
   0x3   :  { %s860_s14 = scalar_lea.vmem %s20_s13, 1024  ;;  %p865_p1 = scmp.lt.s32.totalorder %s20_s13, %s20_s13 }
   0x4   :  { %p861_p0 = scmp.ne.s32.totalorder %s20_s13, %s860_s14  ;;  %p866_p2 = scmp.lt.s32.totalorder %s860_s14, %s860_s14 }
   0x6   :  { %p867_p3 = por %p866_p2, %p865_p1 }
   0x8   :  { %p868_p4 = pnand %p867_p3, %p861_p0 }
   0xa   :  { %871 = shalt.err (!%p868_p4)
}
   0xb   :  { %s897_s15 = smov 128   ;;  %s898_s16 = smov 8  }
   0xc   :  { %25 = dma.hbm_to_vmem [thread:$0]  %s1125_s2, 1024, %s20_s13, [#allocation3], %s897_s15, %s897_s15, %s898_s16  }
   0xd   :  { %892 = dma.done.wait [#allocation3], 1024  }
   0xe   :  { %893 = vsyncadd [#allocation3], 4294966272  ;;  %v899_v0 = vmov 0   ;;  %v30_v1 = vld [vmem:[%s1123_s0] sm:$0xff]  ;;  %v31_v2 = vld [vmem:[%s1123_s0 + $0x8] sm:$0xff]  ;;  %vm56_vm0 = vcmask 523264  }
   0xf   :  { %851 = vset.pattern.permute.xlu0 %v899_v0  ;;  %v55_v3 = vld [vmem:[#allocation2 + $0x38] sm:$0xff]  ;;  %v54_v5 = vld [vmem:[#allocation2 + $0x30] sm:$0xff]  ;;  %v53_v6 = vld [vmem:[#allocation2 + $0x28] sm:$0xff]  ;;  %v900_v53 = vmov 0.0  }
  0x10   :  { %37 = vperm.xlu0 %851, %v30_v1   ;;  %v934_v4 = vand.u32 4294901760, %v55_v3  ;;  %v52_v7 = vld [vmem:[#allocation2 + $0x20] sm:$0xff]  ;;  %v936_v8 = vand.u32 4294901760, %v54_v5  ;;  %v938_v9 = vand.u32 4294901760, %v53_v6  ;;  %v51_v11 = vld [vmem:[#allocation2 + $0x18] sm:$0xff]  ;;  %v50_v12 = vld [vmem:[#allocation2 + $0x10] sm:$0xff] }
  0x11   :  { %v940_v10 = vand.u32 4294901760, %v52_v7  ;;  %v49_v13 = vld [vmem:[#allocation2 + $0x8] sm:$0xff]  ;;  %v945_v15 = vand.u32 4294901760, %v51_v11  ;;  %v948_v16 = vand.u32 4294901760, %v50_v12  ;;  %v48_v18 = vld [vmem:[#allocation2] sm:$0xff] }
  0x12   :  { %v943_v14 = vsub.f32 %v55_v3, %v934_v4  ;;  %731 = vmatprep.subr.mxu0 %v934_v4  ;;  %v950_v17 = vand.u32 4294901760, %v49_v13  ;;  %v953_v19 = vsub.f32 %v54_v5, %v936_v8  ;;  %v956_v20 = vsub.f32 %v53_v6, %v938_v9  ;;  %v662_v51 = vld [vmem:[%s1124_s1] ss:$0 sm:$0xff]  ;;  %s901_s1 = smov [#allocation5]  }
  0x13   :  { %v959_v21 = vsub.f32 %v52_v7, %v940_v10  ;;  %732 = vmatpush3.msra.mxu0 %v934_v4  ;;  %v966_v23 = vsub.f32 %v51_v11, %v945_v15  ;;  %v969_v24 = vsub.f32 %v50_v12, %v948_v16  ;;  %v972_v25 = vand.u32 4294901760, %v48_v18  ;;  %s650_s23 = sshll.u32 %s901_s1, 4  ;;  %s651_s23 = int_to_ptr.vmem [resolvable:$true] %s650_s23 }
  0x14   :  { %40 = vperm.xlu0 %851, %v31_v2   ;;  %v963_v22 = vand.u32 4294901760, %v943_v14  ;;  %733 = vmatprep.subr.mxu0 %v936_v8  ;;  %v975_v26 = vand.u32 4294901760, %v953_v19  ;;  %v978_v27 = vand.u32 4294901760, %v956_v20  ;;  %v990_v31 = vsub.f32 %v49_v13, %v950_v17  ;;  %s872_s24 = scalar_lea.vmem %s651_s23, 256  ;;  %p877_p6 = scmp.lt.s32.totalorder %s651_s23, %s651_s23 }
  0x15   :  { %v981_v28 = vand.u32 4294901760, %v959_v21  ;;  %734 = vmatpush3.msra.mxu0 %v936_v8  ;;  %v987_v30 = vand.u32 4294901760, %v966_v23  ;;  %v1001_v36 = vand.u32 4294901760, %v969_v24  ;;  %v1004_v37 = vsub.f32 %v48_v18, %v972_v25  ;;  %p873_p5 = scmp.ne.s32.totalorder %s651_s23, %s872_s24  ;;  %p878_p7 = scmp.lt.s32.totalorder %s872_s24, %s872_s24 }
  0x16   :  { %v176_v29 = vsub.f32 %v943_v14, %v963_v22  ;;  %735 = vmatprep.subr.mxu0 %v938_v9  ;;  %v183_v32 = vsub.f32 %v953_v19, %v975_v26  ;;  %v190_v33 = vsub.f32 %v956_v20, %v978_v27  ;;  %v1011_v41 = vand.u32 4294901760, %v990_v31 }
  0x17   :  { %736 = vmatpush3.msra.mxu0 %v938_v9  ;;  %v197_v35 = vsub.f32 %v959_v21, %v981_v28  ;;  %v204_v40 = vsub.f32 %v966_v23, %v987_v30  ;;  %v211_v43 = vsub.f32 %v969_v24, %v1001_v36  ;;  %v1018_v44 = vand.u32 4294901760, %v1004_v37  ;;  %p879_p8 = por %p878_p7, %p877_p6 }
  0x18   :  { %v177_v34 = vand.u32 4294901760, %v176_v29  ;;  %737 = vmatprep.subr.mxu0 %v940_v10  ;;  %v184_v38 = vand.u32 4294901760, %v183_v32  ;;  %v191_v39 = vand.u32 4294901760, %v190_v33  ;;  %v218_v46 = vsub.f32 %v990_v31, %v1011_v41 }
  0x19   :  { %738 = vmatpush3.msra.mxu0 %v940_v10  ;;  %v198_v42 = vand.u32 4294901760, %v197_v35  ;;  %v205_v45 = vand.u32 4294901760, %v204_v40  ;;  %v212_v47 = vand.u32 4294901760, %v211_v43  ;;  %v225_v48 = vsub.f32 %v1004_v37, %v1018_v44  ;;  %p880_p9 = pnand %p879_p8, %p873_p5 }
  0x1a   :  { %750 = vmatprep.subr.mxu1 %v177_v34  ;;  %739 = vmatprep.subr.mxu0 %v945_v15  ;;  %v219_v49 = vand.u32 4294901760, %v218_v46 }
  0x1b   :  { %751 = vmatpush3.msra.mxu1 %v177_v34  ;;  %740 = vmatpush3.msra.mxu0 %v945_v15  ;;  %v226_v50 = vand.u32 4294901760, %v225_v48 }
  0x1c   :  { %752 = vmatprep.subr.mxu1 %v184_v38  ;;  %741 = vmatprep.subr.mxu0 %v948_v16 }
  0x1d   :  { %753 = vmatpush3.msra.mxu1 %v184_v38  ;;  %742 = vmatpush3.msra.mxu0 %v948_v16 }
  0x1e   :  { %754 = vmatprep.subr.mxu1 %v191_v39  ;;  %743 = vmatprep.subr.mxu0 %v950_v17 }
  0x1f   :  { %755 = vmatpush3.msra.mxu1 %v191_v39  ;;  %744 = vmatpush3.msra.mxu0 %v950_v17 }
  0x20   :  { %756 = vmatprep.subr.mxu1 %v198_v42  ;;  %745 = vmatprep.subr.mxu0 %v972_v25 }
  0x21   :  { %757 = vmatpush3.msra.mxu1 %v198_v42  ;;  %746 = vmatpush3.msra.mxu0 %v972_v25 }
  0x22   :  { %758 = vmatprep.subr.mxu1 %v205_v45  ;;  %769 = vmatprep.subr.mxu0 %v943_v14 }
  0x23   :  { %759 = vmatpush3.msra.mxu1 %v205_v45 }
  0x24   :  { %760 = vmatprep.subr.mxu1 %v212_v47 }
  0x25   :  { %761 = vmatpush3.msra.mxu1 %v212_v47 }
  0x26   :  { %762 = vmatprep.subr.mxu1 %v219_v49 }
  0x27   :  { %763 = vmatpush3.msra.mxu1 %v219_v49 }
  0x28   :  { %764 = vmatprep.subr.mxu1 %v226_v50 }
  0x29   :  { %765 = vmatpush3.msra.mxu1 %v226_v50 }
  0x2a   :  { %788 = vmatprep.subr.mxu1 %v934_v4 }
  0x8b   :  { %v38_v52 = vpop.permute.xlu0 %37 }
  0x8c   :  { %vm42_vm1 = vcmp.eq.s32.totalorder %v662_v51, %v38_v52 }
  0x8d   :  { %v1035_v54 = vsel %vm42_vm1, 1.0, %v900_v53 }
  0x8e   :  { %v58_v55 = vsel %vm56_vm0, %v1035_v54, 0  ;;  %766 = vmatprep.mubr.msk.f32.mxu1 %vm56_vm0, %v1035_v54 }
  0x8f   :  { %v137_v56 = vsub.f32 %v58_v55, %v58_v55  ;;  %v41_v57 = vpop.permute.xlu0 %40 }
  0x90   :  { %vm43_vm2 = vcmp.eq.s32.totalorder %v662_v51, %v41_v57 }
  0x91   :  { %v1041_v58 = vsel %vm43_vm2, 1.0, %v900_v53  ;;  %v138_v59 = vand.u32 4294901760, %v137_v56 }
  0x92   :  { %v61_v60 = vsel %vm56_vm0, %v1041_v58, 0  ;;  %767 = vmatmul.mubr.msk.f32.vlgmr.msra.gmra.mxu1 %vm56_vm0, %v1041_v58 }
  0x93   :  { %v147_v61 = vsub.f32 %v61_v60, %v61_v60  ;;  %789 = vmatpush3.msra.mxu1 %v934_v4  ;;  %804 = vmatprep.mubr.f32.mxu1 %v138_v59  ;;  %v139_v62 = vsub.f32 %v137_v56, %v138_v59 }
  0x94   :  { %790 = vmatprep.subr.mxu1 %v936_v8 }
  0x95   :  { %791 = vmatpush3.msra.mxu1 %v936_v8  ;;  %v140_v63 = vand.u32 4294901760, %v139_v62  ;;  %v148_v0 = vand.u32 4294901760, %v147_v61 }
  0x96   :  { %792 = vmatprep.subr.mxu1 %v938_v9 }
  0x97   :  { %793 = vmatpush3.msra.mxu1 %v938_v9  ;;  %747 = vmatprep.mubr.f32.mxu0 %v140_v63  ;;  %v149_v1 = vsub.f32 %v147_v61, %v148_v0 }
  0x98   :  { %794 = vmatprep.subr.mxu1 %v940_v10 }
  0x99   :  { %795 = vmatpush3.msra.mxu1 %v940_v10  ;;  %v150_v2 = vand.u32 4294901760, %v149_v1 }
  0x9a   :  { %796 = vmatprep.subr.mxu1 %v945_v15 }
  0x9b   :  { %797 = vmatpush3.msra.mxu1 %v945_v15  ;;  %748 = vmatmul.mubr.f32.vlgmr.msra.gmra.mxu0 %v150_v2 }
  0x9c   :  { %770 = vmatpush3.msra.mxu0 %v943_v14  ;;  %798 = vmatprep.subr.mxu1 %v948_v16 }
  0x9d   :  { %771 = vmatprep.subr.mxu0 %v953_v19  ;;  %785 = vmatprep.mubr.f32.mxu0 %v137_v56 }
  0x9e   :  { %799 = vmatpush3.msra.mxu1 %v948_v16  ;;  %772 = vmatpush3.msra.mxu0 %v953_v19 }
  0x9f   :  { %800 = vmatprep.subr.mxu1 %v950_v17  ;;  %773 = vmatprep.subr.mxu0 %v956_v20 }
  0xa0   :  { %801 = vmatpush3.msra.mxu1 %v950_v17  ;;  %774 = vmatpush3.msra.mxu0 %v956_v20 }
  0xa1   :  { %802 = vmatprep.subr.mxu1 %v972_v25  ;;  %775 = vmatprep.subr.mxu0 %v959_v21 }
  0xa2   :  { %803 = vmatpush3.msra.mxu1 %v972_v25  ;;  %776 = vmatpush3.msra.mxu0 %v959_v21 }
  0xa3   :  { %805 = vmatmul.mubr.f32.vlgmr.msra.gmra.mxu1 %v148_v0  ;;  %826 = vmatprep.subr.mxu1 %v934_v4 }
  0xa4   :  { %777 = vmatprep.subr.mxu0 %v966_v23  ;;  %827 = vmatpush3.msra.mxu1 %v934_v4 }
  0xa5   :  { %842 = vmatprep.mubr.msk.f32.mxu1 %vm56_vm0, %v1035_v54  ;;  %778 = vmatpush3.msra.mxu0 %v966_v23 }
  0xa6   :  { %828 = vmatprep.subr.mxu1 %v936_v8  ;;  %779 = vmatprep.subr.mxu0 %v969_v24 }
  0xa7   :  { %829 = vmatpush3.msra.mxu1 %v936_v8  ;;  %780 = vmatpush3.msra.mxu0 %v969_v24 }
  0xa8   :  { %830 = vmatprep.subr.mxu1 %v938_v9  ;;  %781 = vmatprep.subr.mxu0 %v990_v31 }
  0xa9   :  { %831 = vmatpush3.msra.mxu1 %v938_v9  ;;  %782 = vmatpush3.msra.mxu0 %v990_v31 }
  0xaa   :  { %832 = vmatprep.subr.mxu1 %v940_v10  ;;  %783 = vmatprep.subr.mxu0 %v1004_v37 }
  0xab   :  { %833 = vmatpush3.msra.mxu1 %v940_v10  ;;  %784 = vmatpush3.msra.mxu0 %v1004_v37 }
  0xac   :  { %834 = vmatprep.subr.mxu1 %v945_v15  ;;  %786 = vmatmul.mubr.f32.vlgmr.msra.gmra.mxu0 %v147_v61 }
  0xad   :  { %807 = vmatprep.subr.mxu0 %v963_v22  ;;  %835 = vmatpush3.msra.mxu1 %v945_v15 }
  0xae   :  { %808 = vmatpush3.msra.mxu0 %v963_v22  ;;  %823 = vmatprep.mubr.msk.f32.mxu0 %vm56_vm0, %v1035_v54 }
  0xaf   :  { %836 = vmatprep.subr.mxu1 %v948_v16  ;;  %809 = vmatprep.subr.mxu0 %v975_v26 }
  0xb0   :  { %837 = vmatpush3.msra.mxu1 %v948_v16  ;;  %810 = vmatpush3.msra.mxu0 %v975_v26 }
  0xb1   :  { %838 = vmatprep.subr.mxu1 %v950_v17  ;;  %811 = vmatprep.subr.mxu0 %v978_v27 }
  0xb2   :  { %839 = vmatpush3.msra.mxu1 %v950_v17  ;;  %812 = vmatpush3.msra.mxu0 %v978_v27 }
  0xb3   :  { %840 = vmatprep.subr.mxu1 %v972_v25  ;;  %813 = vmatprep.subr.mxu0 %v981_v28 }
  0xb4   :  { %841 = vmatpush3.msra.mxu1 %v972_v25  ;;  %814 = vmatpush3.msra.mxu0 %v981_v28 }
  0xb5   :  { %843 = vmatmul.mubr.msk.f32.vlgmr.msra.gmra.mxu1 %vm56_vm0, %v1041_v58  ;;  %815 = vmatprep.subr.mxu0 %v987_v30 }
  0xb6   :  { %816 = vmatpush3.msra.mxu0 %v987_v30 }
  0xb7   :  { %817 = vmatprep.subr.mxu0 %v1001_v36 }
  0xb8   :  { %818 = vmatpush3.msra.mxu0 %v1001_v36 }
  0xb9   :  { %819 = vmatprep.subr.mxu0 %v1011_v41 }
  0xba   :  { %820 = vmatpush3.msra.mxu0 %v1011_v41 }
  0xbb   :  { %821 = vmatprep.subr.mxu0 %v1018_v44 }
  0xbc   :  { %822 = vmatpush3.msra.mxu0 %v1018_v44 }
  0xbd   :  { %824 = vmatmul.mubr.msk.f32.vlgmr.msra.gmra.mxu0 %vm56_vm0, %v1041_v58 }
 0x152   :  { %v768_v4 = vpop.f32.mrf.mxu1 }
 0x154   :  { %v263_v7 = vpop.f32.mrf.mxu1 }
 0x15b   :  { %v749_v3 = vpop.f32.mrf.mxu0 }
 0x15c   :  { %v270_v8 = vadd.f32 %v768_v4, %v749_v3 }
 0x15d   :  { %v142_v5 = vpop.f32.mrf.mxu0 }
 0x15e   :  { %v264_v11 = vadd.f32 %v263_v7, %v142_v5 }
 0x163   :  { %v806_v9 = vpop.f32.mrf.mxu1 }
 0x165   :  { %v445_v14 = vpop.f32.mrf.mxu1 }
 0x16c   :  { %v787_v6 = vpop.f32.mrf.mxu0 }
 0x16d   :  { %v365_v12 = vadd.f32 %v787_v6, %v270_v8 }
 0x16e   :  { %v357_v10 = vpop.f32.mrf.mxu0 }
 0x16f   :  { %v358_v13 = vadd.f32 %v357_v10, %v264_v11  ;;  %v454_v15 = vadd.f32 %v806_v9, %v365_v12 }
 0x171   :  { %v446_v19 = vadd.f32 %v445_v14, %v358_v13 }
 0x175   :  { %v844_v16 = vpop.f32.mrf.mxu1 }
 0x177   :  { %v633_v23 = vpop.f32.mrf.mxu1 }
 0x17d   :  { %v825_v17 = vpop.f32.mrf.mxu0 }
 0x17e   :  { %v555_v18 = vadd.f32 %v825_v17, %v454_v15 }
 0x17f   :  { %v548_v20 = vpop.f32.mrf.mxu0 }
 0x180   :  { %v640_v21 = vadd.f32 %v844_v16, %v555_v18  ;;  %v549_v22 = vadd.f32 %v548_v20, %v446_v19 }
 0x182   :  { %644 = vst [vmem:[#allocation5 + $0x8] sm:$0xff] %v640_v21  ;;  %v634_v24 = vadd.f32 %v633_v23, %v549_v22 }
 0x184   :  { %643 = vst [vmem:[#allocation5] sm:$0xff] %v634_v24 }
 0x185   :  { %883 = shalt.err (!%p880_p9)
}
 0x186   :  { %656 = dma.vmem_to_hbm [thread:$0]  %s651_s23, 256, %s1126_s3, [#allocation4], %s897_s15, %s897_s15, %s898_s16  }
 0x187   :  { %894 = dma.done.wait [#allocation4], 256  }
 0x188   :  { %895 = vsyncadd [#allocation4], 4294967040 }
 0x189   :  { %660 = vsyncpa [#allocation3], 1 }
 0x18a   :  { %661 = vsyncpa [#allocation4], 1 }

</bundles_post_ra>
